<compile_context>
chip_gen: v5e
topology: v5e:2x2
jax: 0.10.0
libtpu: 0.0.40
codegen_flags: <defaults>
</compile_context>

<pallas_src>
import jax
import jax.numpy as jnp
from jax.experimental import pallas as pl
from jax.experimental.pallas import tpu as pltpu


def ga2116_kernel(x_ref, w_ref, bias_ref, thr_ref, fac_ref, o_ref):
    # x_ref   : (C1, T)  in-dtype  one HW tile, channels on sublanes, HW on lanes
    # w_ref   : (C2, C1) f32       conv weight with BN scale folded in (VMEM)
    # bias_ref: (C2, 1)  f32       folded BN bias (VMEM)
    # thr/fac : (1,)     f32       scalars in SMEM
    # o_ref   : (C2, T)  out-dtype
    thr = thr_ref[0]
    fac = fac_ref[0]

    x = x_ref[...].astype(jnp.float32)   # (C1, T); no-op cast when input is f32
    r = x[0:1, :]                        # (1, T)
    g = x[1:2, :]
    b = x[2:3, :]

    # mask*factor with zeros replaced by 1.  Exact for every factor value:
    # when factor == 0 the PyTorch path collapses to an all-ones mask.
    sel = jnp.logical_and((g - r) > thr, fac != jnp.float32(0.0))
    adj = jnp.where(sel, fac, jnp.float32(1.0))              # (1, T) lane vector

    yr = r * adj
    yg = g * adj
    yb = b * adj

    # 1x1 conv as VPU broadcast FMAs: out[c2,:] = sum_c w[c2,c] * y[c,:]
    w = w_ref[...]                       # (C2, C1), BN scale already folded in
    conv = (w[:, 0:1] * yr
            + w[:, 1:2] * yg
            + w[:, 2:3] * yb)            # (C2, T)

    z = conv + bias_ref[...]             # + (C2, 1) broadcast over lanes
    o_ref[...] = (z * jax.nn.sigmoid(z)).astype(o_ref.dtype)   # SiLU


def ga2116_forward(x_nchw, conv_w, bn_gamma, bn_beta, bn_mean, bn_var,
                   threshold, factor, eps=1e-5,
                   lane_tile_cap=131072,            # ~128K lanes per tile
                   out_dtype=None,
                   vmem_limit_bytes=48 * 1024 * 1024):
    N, C1, H, W = x_nchw.shape
    assert C1 == 3, "GA2116 requires 3 input channels (RGB)"
    C2 = conv_w.shape[0]
    HW = H * W
    out_dtype = x_nchw.dtype if out_dtype is None else out_dtype

    LANE = 128
    # HW tile: multiple of 128 lanes (lane-dense stores), capped so the
    # double-buffered in+out working set stays well inside scoped VMEM on
    # every generation (v7x: 64 MiB physical is the binding constraint).
    if HW < LANE:
        T = HW                                        # single full-extent block
    else:
        T = min(pl.cdiv(HW, LANE) * LANE, lane_tile_cap)
    num_tiles = pl.cdiv(HW, T)
    # v7x megacore: keep at least 2 grid steps when the shape allows it.
    if N * num_tiles < 2 and T > LANE:
        T = pl.cdiv(pl.cdiv(HW, 2), LANE) * LANE
        num_tiles = pl.cdiv(HW, T)

    # NCHW -> (N, C1, HW): free reshape; no transpose, no pad, no astype.
    x = x_nchw.reshape(N, C1, HW)

    # Fold BatchNorm (inference) into the conv weight / bias.
    scale = (bn_gamma.astype(jnp.float32)
             / jnp.sqrt(bn_var.astype(jnp.float32) + eps))                  # (C2,)
    w_folded = conv_w.reshape(C2, C1).astype(jnp.float32) * scale[:, None]  # (C2, C1)
    bias = (bn_beta.astype(jnp.float32)
            - bn_mean.astype(jnp.float32) * scale).reshape(C2, 1)           # (C2, 1)

    thr_arr = jnp.asarray(threshold, jnp.float32).reshape(1)
    fac_arr = jnp.asarray(factor, jnp.float32).reshape(1)

    in_bytes = jnp.dtype(x.dtype).itemsize
    ob = jnp.dtype(out_dtype).itemsize
    cost = pl.CostEstimate(
        flops=N * HW * (2 * C1 * C2 + C1 + 2 * C2 + 2),
        transcendentals=N * HW * C2,
        bytes_accessed=N * HW * (C1 * in_bytes + C2 * ob) + (C2 * C1 + C2) * 4,
    )

    out = pl.pallas_call(
        ga2116_kernel,
        out_shape=jax.ShapeDtypeStruct((N, C2, HW), out_dtype),
        grid=(N, num_tiles),
        in_specs=[
            pl.BlockSpec((None, C1, T), lambda n, t: (n, 0, t)),   # x tile
            pl.BlockSpec((C2, C1), lambda n, t: (0, 0)),           # folded weight
            pl.BlockSpec((C2, 1), lambda n, t: (0, 0)),            # folded bias
            pl.BlockSpec(memory_space=pltpu.MemorySpace.SMEM),     # threshold
            pl.BlockSpec(memory_space=pltpu.MemorySpace.SMEM),     # factor
        ],
        out_specs=pl.BlockSpec((None, C2, T), lambda n, t: (n, 0, t)),
        compiler_params=pltpu.CompilerParams(
            dimension_semantics=("parallel", "parallel"),
            vmem_limit_bytes=vmem_limit_bytes),
        cost_estimate=cost,
    )(x, w_folded, bias, thr_arr, fac_arr)

    # (N, C2, HW) -> NCHW: free reshape, no transpose.
    return out.reshape(N, C2, H, W)


def ga2116_reference(x_nchw, conv_w, bn_gamma, bn_beta, bn_mean, bn_var,
                     threshold, factor, eps=1e-5):
    # Plain-JAX reference for correctness checking.
    r = x_nchw[:, 0, :, :]
    g = x_nchw[:, 1, :, :]
    diff = g - r
    mask = (diff > threshold).astype(jnp.float32)
    adj = mask * factor
    adj = jnp.where(adj == 0, 1.0, adj)[:, None, :, :]
    y = x_nchw * adj
    C2 = conv_w.shape[0]
    w2 = conv_w.reshape(C2, 3)
    conv = jnp.einsum("oc,nchw->nohw", w2, y)
    scale = bn_gamma / jnp.sqrt(bn_var + eps)
    bias = bn_beta - bn_mean * scale
    z = conv * scale[None, :, None, None] + bias[None, :, None, None]
    return z * jax.nn.sigmoid(z)


if __name__ == "__main__":
    key = jax.random.PRNGKey(0)
    k_x, k_w = jax.random.split(key)

    N, C1, H, W = 2, 3, 16, 16
    C2 = 8

    x = jax.random.normal(k_x, (N, C1, H, W), dtype=jnp.float32)

    # deterministic parameter init
    conv_w = jax.random.normal(k_w, (C2, C1, 1, 1), dtype=jnp.float32) * 0.1
    bn_gamma = jnp.ones((C2,), jnp.float32) * 1.1
    bn_beta = jnp.ones((C2,), jnp.float32) * 0.05
    bn_mean = jnp.ones((C2,), jnp.float32) * 0.02
    bn_var = jnp.ones((C2,), jnp.float32) * 0.9
    threshold = jnp.float32(0.0824)
    factor = jnp.float32(1.6)

    ref = ga2116_reference(x, conv_w, bn_gamma, bn_beta, bn_mean, bn_var,
                           threshold, factor)

    # f32-output path
    out = ga2116_forward(x, conv_w, bn_gamma, bn_beta, bn_mean, bn_var,
                         threshold, factor)
    out = jax.block_until_ready(out)
    assert out.shape == (N, C2, H, W)
    assert jnp.allclose(out, ref, atol=1e-5, rtol=1e-5), "mismatch vs reference"

    # bf16-output path (halves dominant HBM write traffic on v5e/v6e/v7x)
    out_bf16 = ga2116_forward(x, conv_w, bn_gamma, bn_beta, bn_mean, bn_var,
                              threshold, factor, out_dtype=jnp.bfloat16)
    out_bf16 = jax.block_until_ready(out_bf16)
    assert out_bf16.dtype == jnp.bfloat16
    assert jnp.allclose(out_bf16.astype(jnp.float32), ref,
                        atol=5e-2, rtol=5e-2), "bf16 mismatch vs reference"

    print("KERNEL_OK")
</pallas_src>

<mosaic_0001>
module attributes {stable_mosaic.version = 11 : i64} {
  func.func @ga2116_kernel(%arg0: i32, %arg1: i32, %arg2: memref<1x3x256xf32, #tpu.memory_space<vmem>>, %arg3: memref<8x3xf32, #tpu.memory_space<vmem>>, %arg4: memref<8x1xf32, #tpu.memory_space<vmem>>, %arg5: memref<1xf32, #tpu.memory_space<smem>>, %arg6: memref<1xf32, #tpu.memory_space<smem>>, %arg7: memref<1x8x256xf32, #tpu.memory_space<vmem>>) attributes {dimension_semantics = [#tpu.dimension_semantics<parallel>, #tpu.dimension_semantics<parallel>], iteration_bounds = array<i64: 2, 1>, scalar_prefetch = 0 : i64, scratch_operands = 0 : i64, tpu.core_type = #tpu.core_type<tc>, window_params = [{transform_indices = @transform_0, window_bounds = array<i64: 1, 3, 256>}, {pipeline_mode = #tpu.pipeline_mode<synchronous>, transform_indices = @transform_1, window_bounds = array<i64: 8, 3>}, {pipeline_mode = #tpu.pipeline_mode<synchronous>, transform_indices = @transform_2, window_bounds = array<i64: 8, 1>}, {transform_indices = @transform_3, window_bounds = array<i64: 1>}, {transform_indices = @transform_4, window_bounds = array<i64: 1>}, {transform_indices = @transform_5, window_bounds = array<i64: 1, 8, 256>}]} {
    %c0 = arith.constant 0 : index
    %0 = memref.load %arg5[%c0] : memref<1xf32, #tpu.memory_space<smem>>
    %c0_0 = arith.constant 0 : index
    %1 = memref.load %arg6[%c0_0] : memref<1xf32, #tpu.memory_space<smem>>
    %c0_1 = arith.constant 0 : index
    %c0_2 = arith.constant 0 : index
    %c0_3 = arith.constant 0 : index
    %2 = vector.load %arg2[%c0_1, %c0_2, %c0_3] : memref<1x3x256xf32, #tpu.memory_space<vmem>>, vector<1x3x256xf32>
    %3 = vector.shape_cast %2 : vector<1x3x256xf32> to vector<3x256xf32>
    %4 = vector.extract_strided_slice %3 {offsets = [0, 0], sizes = [1, 256], strides = [1, 1]} : vector<3x256xf32> to vector<1x256xf32>
    %5 = vector.extract_strided_slice %3 {offsets = [1, 0], sizes = [1, 256], strides = [1, 1]} : vector<3x256xf32> to vector<1x256xf32>
    %6 = vector.extract_strided_slice %3 {offsets = [2, 0], sizes = [1, 256], strides = [1, 1]} : vector<3x256xf32> to vector<1x256xf32>
    %7 = arith.subf %5, %4 : vector<1x256xf32>
    %8 = vector.broadcast %0 : f32 to vector<1x256xf32>
    %9 = arith.cmpf ogt, %7, %8 : vector<1x256xf32>
    %cst = arith.constant 0.000000e+00 : f32
    %10 = arith.cmpf one, %1, %cst : f32
    %11 = vector.broadcast %10 : i1 to vector<1x256xi1>
    %12 = arith.andi %9, %11 : vector<1x256xi1>
    %cst_4 = arith.constant 1.000000e+00 : f32
    %13 = vector.broadcast %1 : f32 to vector<1x256xf32>
    %14 = vector.broadcast %cst_4 : f32 to vector<1x256xf32>
    %15 = arith.select %12, %13, %14 : vector<1x256xi1>, vector<1x256xf32>
    %16 = arith.mulf %4, %15 : vector<1x256xf32>
    %17 = arith.mulf %5, %15 : vector<1x256xf32>
    %18 = arith.mulf %6, %15 : vector<1x256xf32>
    %c0_5 = arith.constant 0 : index
    %c0_6 = arith.constant 0 : index
    %19 = vector.load %arg3[%c0_5, %c0_6] : memref<8x3xf32, #tpu.memory_space<vmem>>, vector<8x3xf32>
    %20 = vector.extract_strided_slice %19 {offsets = [0, 0], sizes = [8, 1], strides = [1, 1]} : vector<8x3xf32> to vector<8x1xf32>
    %21 = vector.broadcast %20 : vector<8x1xf32> to vector<8x256xf32>
    %22 = vector.broadcast %16 : vector<1x256xf32> to vector<8x256xf32>
    %23 = arith.mulf %21, %22 : vector<8x256xf32>
    %24 = vector.extract_strided_slice %19 {offsets = [0, 1], sizes = [8, 1], strides = [1, 1]} : vector<8x3xf32> to vector<8x1xf32>
    %25 = vector.broadcast %24 : vector<8x1xf32> to vector<8x256xf32>
    %26 = vector.broadcast %17 : vector<1x256xf32> to vector<8x256xf32>
    %27 = arith.mulf %25, %26 : vector<8x256xf32>
    %28 = arith.addf %23, %27 : vector<8x256xf32>
    %29 = vector.extract_strided_slice %19 {offsets = [0, 2], sizes = [8, 1], strides = [1, 1]} : vector<8x3xf32> to vector<8x1xf32>
    %30 = vector.broadcast %29 : vector<8x1xf32> to vector<8x256xf32>
    %31 = vector.broadcast %18 : vector<1x256xf32> to vector<8x256xf32>
    %32 = arith.mulf %30, %31 : vector<8x256xf32>
    %33 = arith.addf %28, %32 : vector<8x256xf32>
    %c0_7 = arith.constant 0 : index
    %c0_8 = arith.constant 0 : index
    %34 = vector.load %arg4[%c0_7, %c0_8] : memref<8x1xf32, #tpu.memory_space<vmem>>, vector<8x1xf32>
    %35 = vector.broadcast %34 : vector<8x1xf32> to vector<8x256xf32>
    %36 = arith.addf %33, %35 : vector<8x256xf32>
    %37 = arith.negf %36 : vector<8x256xf32>
    %38 = math.exp %37 : vector<8x256xf32>
    %cst_9 = arith.constant 1.000000e+00 : f32
    %39 = vector.broadcast %cst_9 : f32 to vector<8x256xf32>
    %40 = arith.addf %39, %38 : vector<8x256xf32>
    %41 = arith.divf %39, %40 : vector<8x256xf32>
    %42 = arith.mulf %36, %41 : vector<8x256xf32>
    %c0_10 = arith.constant 0 : index
    %c0_11 = arith.constant 0 : index
    %c0_12 = arith.constant 0 : index
    %43 = vector.load %arg7[%c0_10, %c0_11, %c0_12] : memref<1x8x256xf32, #tpu.memory_space<vmem>>, vector<1x8x256xf32>
    %44 = vector.shape_cast %43 : vector<1x8x256xf32> to vector<8x256xf32>
    %45 = vector.shape_cast %42 : vector<8x256xf32> to vector<1x8x256xf32>
    tpu.vector_store %arg7[%c0_10, %c0_11, %c0_12], %45 {strides = array<i32>} : memref<1x8x256xf32, #tpu.memory_space<vmem>>, vector<1x8x256xf32>,
    return
  }
  func.func @transform_0(%arg0: i32, %arg1: i32) -> (i32, i32, i32) {
    %c0_i32 = arith.constant 0 : i32
    %c0_i32_0 = arith.constant 0 : i32
    return %arg0, %c0_i32, %arg1 : i32, i32, i32
  }
  func.func @transform_1(%arg0: i32, %arg1: i32) -> (i32, i32) {
    %c0_i32 = arith.constant 0 : i32
    %c0_i32_0 = arith.constant 0 : i32
    %c0_i32_1 = arith.constant 0 : i32
    return %c0_i32, %c0_i32_0 : i32, i32
  }
  func.func @transform_2(%arg0: i32, %arg1: i32) -> (i32, i32) {
    %c0_i32 = arith.constant 0 : i32
    %c0_i32_0 = arith.constant 0 : i32
    %c0_i32_1 = arith.constant 0 : i32
    return %c0_i32, %c0_i32_0 : i32, i32
  }
  func.func @transform_3(%arg0: i32, %arg1: i32) -> i32 {
    %c0_i32 = arith.constant 0 : i32
    %c0_i32_0 = arith.constant 0 : i32
    return %c0_i32 : i32
  }
  func.func @transform_4(%arg0: i32, %arg1: i32) -> i32 {
    %c0_i32 = arith.constant 0 : i32
    %c0_i32_0 = arith.constant 0 : i32
    return %c0_i32 : i32
  }
  func.func @transform_5(%arg0: i32, %arg1: i32) -> (i32, i32, i32) {
    %c0_i32 = arith.constant 0 : i32
    %c0_i32_0 = arith.constant 0 : i32
    return %arg0, %c0_i32, %arg1 : i32, i32, i32
  }
}

</mosaic_0001>

<bundles_post_ra>
// kernel: tpu_custom_call.1
= control target key start
LH: loop header
LB: loop body
LE: loop exit
PB: predicated region body
PF: predicated region fallthrough
CT: control target
= control target key end

     0   :  { %s786_s0 = inlined_call_operand.vmem [shape: f32[2,3,256], index: 0, kind: input, shape index: {}]   ;;  %s787_s1 = inlined_call_operand.vmem [shape: f32[8,3], index: 1, kind: input, shape index: {}]   ;;  %s788_s2 = inlined_call_operand.vmem [shape: f32[8,1], index: 2, kind: input, shape index: {}]   ;;  %s789_s3 = inlined_call_operand.<no memory space> [shape: f32[1], index: 3, kind: input, shape index: {}]   ;;  %s790_s4 = inlined_call_operand.<no memory space> [shape: f32[1], index: 4, kind: input, shape index: {}]   ;;  %s791_s5 = inlined_call_operand.hbm [shape: f32[2,8,256], index: 5, kind: output, shape index: {}]  }
   0x1   :  { %10 = sst [smem:[#allocation2]] %s789_s3 }
   0x2   :  { %11 = sst [smem:[#allocation3]] %s790_s4 }
   0x3   :  { %12 = vsyncpa [#allocation5], 0 }
   0x4   :  { %14 = vsyncpa [#allocation5 + $0x1], 0  ;;  %s679_s22 = smov 0   ;;  %s681_s23 = smov 0  }
   0x5   :  { %s683_s24 = smov 0   ;;  %s685_s25 = smov 0  }
   0x6   :  { %s687_s26 = smov 0   ;;  %s689_s27 = smov 0  }
   0x7 LB: > { %s471_s3 = sadd.s32 4294967295, %s638_s27   ;;  %s472_s4 = sadd.s32 4294967294, %s638_s27   ;;  %s638_s27 = sphi %s689_s27, %s20_s27   ;;  %s634_s26 = sphi %s687_s26, %s798_s26   ;;  %s630_s25 = sphi %s685_s25, %s797_s25   ;;  %s626_s24 = sphi %s683_s24, %s796_s24   ;;  %s622_s23 = sphi %s681_s23, %s795_s23   ;;  %s618_s22 = sphi %s679_s22, %s794_s22  }
   0x8   : > { %s32_s28 = sadd.s32 1, %s634_s26  ;;  %s153_s29 = sadd.s32 1, %s626_s24 }
   0x9   : > { %p34_p0 = scmp.ge.s32.totalorder %s32_s28, 2  ;;  %p163_p1 = scmp.ne.s32.totalorder %s626_s24, %s622_s23 }
   0xa   : > { %p164_p2 = scmp.eq.s32.totalorder %s471_s3, 1  ;;  %p169_p3 = scmp.ne.s32.totalorder %s622_s23, %s618_s22 }
   0xb   : > { %s800_s28 = smov (%p34_p0, %s32_s28), 0  ;;  %p170_p5 = scmp.eq.s32.totalorder %s472_s4, 1 }
   0xc   : > { %p719_p4 = por %p164_p2, %p163_p1  ;;  %s148_s6 = ssub.s32 %s634_s26, %s800_s28 }
   0xd   : > { %p475_p6 = scmp.ge.s32.totalorder %s638_s27, 1  ;;  %p151_p7 = scmp.eq.s32.totalorder %s148_s6, 0 }
   0xe   : > { %p726_p8 = por %p170_p5, %p169_p3  ;;  %p213_p9 = scmp.lt.s32.totalorder %s638_s27, 3 }
   0xf   : > { %s732_s8 = scalar_select %p151_p7, %s626_s24, %s153_s29  }
  0x10   : > { %p214_p10 = pnand %p475_p6, %p213_p9 }
  0x11   : > { %p246_p11 = scmp.lt.s32.totalorder (!%p214_p10), %s630_s25, 1  ;;  %s257_s14 = sld [smem:[#allocation3]] (!%p214_p10) }
  0x12   : > { %217 = sbr.rel (%p214_p10) target bundleno = 191 (0xbf), region = 40  ;;  %s256_s19 = sld [smem:[#allocation2]] (!%p214_p10) }
  0x13   : > { %s242_s21 = sand.u32 (!%p214_p10), 1, %s622_s23   ;;  %s488_s4 = sshll.u32 (!%p214_p10), %s630_s25, 4 }
  0x14   : > { %s476_s3 = sshll.u32 (!%p214_p10), %s242_s21, 4  ;;  %s390_s9 = scalar_lea.hbm (!%p214_p10), %s791_s5, %s488_s4 }
  0x15   : > { %s394_s11 = sshll.u32 (!%p214_p10), %s390_s9, 4  ;;  %s377_s12 = scalar_lea.sflag (!%p214_p10), [#allocation5], %s242_s21  ;;  %s395_s11 = int_to_ptr.hbm [resolvable:$true] %s394_s11 }
  0x16   : > { %s580_s17 = scalar_lea.hbm (!%p214_p10), %s791_s5, 32 }
  0x17   : > { %v281_v0 = vld [vmem:[%s787_s1] sm:$0xff]  ;;  %v640_v1 = vmov 0   ;;  %v641_v2 = vmov 2   ;;  %v642_v4 = vmov 1   ;;  %s247_s13 = scalar_select %p246_p11, %s630_s25, 1  ;;  %v270_v10 = vstv %s257_s14 }
  0x18   : > { %547 = vset.pattern.permute.xlu0 %v640_v1  ;;  %549 = vset.pattern.permute.xlu1 %v641_v2  ;;  %v326_v3 = vld [vmem:[%s788_s2] sm:$0xff]  ;;  %p265_p12 = scmp.ne.f32.partialorder %s257_s14, 0.0  ;;  %v263_v8 = vstv %s256_s19  ;;  %s244_s25 = scalar_lea.vmem [#allocation4], %s476_s3 }
  0x19   : > { %284 = vperm.xlu0 %547, %v281_v0   ;;  %312 = vperm.xlu1 %549, %v281_v0   ;;  %s487_s15 = sshll.u32 %s247_s13, 3  ;;  %s392_s10 = sshll.u32 %s244_s25, 4  ;;  %s393_s10 = int_to_ptr.vmem [resolvable:$true] %s392_s10 }
  0x1a   : > { %s253_s18 = scalar_lea.vmem %s786_s0, %s487_s15  ;;  %s574_s13 = sshra.s32 %s395_s11, 4  ;;  %s575_s13 = int_to_ptr.hbm [resolvable:$true] %s574_s13 }
  0x1b   : > { %v258_v5 = vld [vmem:[%s253_s18] sm:$0x77]  ;;  %s266_s20 = scalar_select %p265_p12, 1, 0 }
  0x1c   : > { %v260_v6 = vrot.slane %v258_v5, 7  ;;  %s576_s14 = scalar_lea.hbm %s575_s13, 16  ;;  %p581_p2 = scmp.lt.s32.totalorder %s575_s13, %s791_s5 }
  0x1d   : > { %v267_v9 = vstv %s266_s20  ;;  %p577_p13 = scmp.ne.s32.totalorder %s575_s13, %s576_s14  ;;  %p582_p3 = scmp.lt.s32.totalorder %s580_s17, %s576_s14 }
  0x1e   : > { %v262_v7 = vsub.f32 %v258_v5, %v260_v6  ;;  %vm268_vm1 = vcmp.eq.s32.totalorder %v267_v9, 1 }
  0x1f   : > { %p578_p0 = pnand %p577_p13, %p719_p4  ;;  %p583_p5 = por %p582_p3, %p581_p2 }
  0x20   : > { %vm264_vm0 = vcmp.gt.f32.partialorder %v262_v7, %v263_v8 }
  0x21   : > { %548 = vset.pattern.permute.xlu0 %v642_v4  ;;  %550 = vset.pattern.permute.xlu1 %v640_v1  ;;  %vm269_vm2 = vmand %vm264_vm0, %vm268_vm1  ;;  %p579_p1 = pneg %p578_p0 }
  0x22   : > { %297 = vperm.xlu0 %548, %v281_v0   ;;  %329 = vperm.xlu1 %550, %v326_v3   ;;  %v271_v11 = vsel %vm269_vm2, %v270_v10, 1.0 }
  0x23   : > { %v479_v12 = vrot.slane %v271_v11, 9  ;;  %v278_v13 = vrot.slane %v271_v11, 7  ;;  %v277_v15 = vmul.f32 %v271_v11, %v258_v5  ;;  %p584_p6 = pnand %p583_p5, %p579_p1 }
  0x25   : > { %v276_v14 = vmul.f32 %v479_v12, %v258_v5  ;;  %v280_v17 = vmul.f32 %v278_v13, %v258_v5  ;;  %v301_v20 = vperm.slane %v277_v15, 1  ;;  %v302_v21 = vperm.slane %v277_v15, 5 }
  0x27   : > { %v288_v18 = vperm.slane %v276_v14, 0  ;;  %v289_v19 = vperm.slane %v276_v14, 4  ;;  %v316_v23 = vperm.slane %v280_v17, 2  ;;  %v317_v24 = vperm.slane %v280_v17, 6 }
  0x28   : > { %v305_v27 = vperm.slane %v301_v20, 1  ;;  %v306_v28 = vperm.slane %v302_v21, 1 }
  0x29   : > { %v292_v25 = vperm.slane %v288_v18, 0  ;;  %v293_v26 = vperm.slane %v289_v19, 0  ;;  %v320_v29 = vperm.slane %v316_v23, 2  ;;  %v321_v30 = vperm.slane %v317_v24, 2 }
  0x2a   : > { %551 = vset.pattern.permute.xlu0 %v640_v1 }
  0x8b   : > { %v285_v16 = vpop.permute.xlu0 %284  ;;  %v313_v22 = vpop.permute.xlu1 %312 }
  0x8c   : > { %v294_v32 = vmul.f32 %v292_v25, %v285_v16  ;;  %v295_v33 = vmul.f32 %v293_v26, %v285_v16  ;;  %v322_v36 = vmul.f32 %v320_v29, %v313_v22  ;;  %v323_v37 = vmul.f32 %v321_v30, %v313_v22 }
  0x94   : > { %v298_v31 = vpop.permute.xlu0 %297  ;;  %v330_v40 = vpop.permute.xlu1 %329 }
  0x95   : > { %v307_v34 = vmul.f32 %v305_v27, %v298_v31  ;;  %v308_v35 = vmul.f32 %v306_v28, %v298_v31 }
  0x97   : > { %v309_v38 = vadd.f32 %v307_v34, %v294_v32  ;;  %v310_v39 = vadd.f32 %v308_v35, %v295_v33 }
  0x99   : > { %v324_v41 = vadd.f32 %v322_v36, %v309_v38  ;;  %v325_v42 = vadd.f32 %v323_v37, %v310_v39 }
  0x9b   : > { %v332_v43 = vadd.f32 %v330_v40, %v324_v41  ;;  %v333_v44 = vadd.f32 %v330_v40, %v325_v42 }
  0x9d   : > { %v480_v45 = vmul.f32 -1.442695, %v332_v43  ;;  %v481_v46 = vmul.f32 -1.442695, %v333_v44 }
  0x9f   : > { %552 = vpow2.f32 %v480_v45 }
  0xa0   : > { %554 = vpow2.f32 %v481_v46 }
  0xa5   : > { %v553_v47 = vpop.eup %552 }
  0xa6   : > { %v555_v48 = vpop.eup %554  ;;  %v340_v49 = vadd.f32 1.0, %v553_v47 }
  0xa7   : > { %v341_v50 = vadd.f32 1.0, %v555_v48 }
  0xa8   : > { %556 = vrcp.f32 %v340_v49  ;;  %v353_v56 = vand.u32 2147483648, %v340_v49  ;;  %v351_v59 = vand.u32 2147483647, %v340_v49  ;;  %vm347_vm5 = vweird.f32 %v340_v49 }
  0xa9   : > { %558 = vrcp.f32 %v341_v50  ;;  %v368_v60 = vand.u32 2147483648, %v341_v50  ;;  %v366_v62 = vand.u32 2147483647, %v341_v50  ;;  %vm362_vm7 = vweird.f32 %v341_v50 }
  0xaa   : > { %v354_v0 = vor.u32 1.1754944e-38, %v353_v56  ;;  %vm352_vm8 = vcmp.eq.f32.partialorder %v351_v59, 8.507059e+37 }
  0xab   : > { %v369_v3 = vor.u32 1.1754944e-38, %v368_v60  ;;  %vm367_vm10 = vcmp.eq.f32.partialorder %v366_v62, 8.507059e+37 }
  0xae   : > { %v557_v51 = vpop.eup %556 }
  0xaf   : > { %v559_v52 = vpop.eup %558  ;;  %v343_v53 = vmul.f32 %v557_v51, %v340_v49  ;;  %vm348_vm3 = vweird.f32 %v557_v51 }
  0xb0   : > { %v358_v54 = vmul.f32 %v559_v52, %v341_v50  ;;  %vm363_vm4 = vweird.f32 %v559_v52  ;;  %vm349_vm6 = vmor %vm347_vm5, %vm348_vm3 }
  0xb1   : > { %v344_v55 = vsub.f32 1.0, %v343_v53  ;;  %vm364_vm9 = vmor %vm362_vm7, %vm363_vm4 }
  0xb2   : > { %v359_v57 = vsub.f32 1.0, %v358_v54 }
  0xb3   : > { %v345_v58 = vmul.f32 %v557_v51, %v344_v55 }
  0xb4   : > { %v360_v61 = vmul.f32 %v559_v52, %v359_v57 }
  0xb5   : > { %v346_v63 = vadd.f32 %v557_v51, %v345_v58 }
  0xb6   : > { %v361_v1 = vadd.f32 %v559_v52, %v360_v61 }
  0xb7   : > { %v350_v2 = vsel %vm349_vm6, %v557_v51, %v346_v63 }
  0xb8   : > { %v355_v4 = vsel %vm352_vm8, %v354_v0, %v350_v2  ;;  %v365_v5 = vsel %vm364_vm9, %v559_v52, %v361_v1 }
  0xb9   : > { %v370_v6 = vsel %vm367_vm10, %v369_v3, %v365_v5  ;;  %v372_v7 = vmul.f32 %v355_v4, %v332_v43 }
  0xba   : > { %v373_v8 = vmul.f32 %v370_v6, %v333_v44 }
  0xbb   : > { %374 = vst [vmem:[%s244_s25] sm:$0xff] %v372_v7 }
  0xbc   : > { %375 = vst [vmem:[%s244_s25 + $0x8] sm:$0xff] %v373_v8 }
  0xbd   : > { %587 = shalt.err (!%p584_p6)
}
  0xbe   : > { %489 = dma.vmem_to_hbm [thread:$0]  (%p719_p4), %s393_s10, 256, %s395_s11, %s377_s12  }
  0xbf PF: > { %p495_p7 = scmp.ge.s32.totalorder %s638_s27, 2  ;;  %s406_s20 = sand.u32 1, %s618_s22  }
  0xc0   : > { %s407_s21 = scalar_lea.sflag [#allocation5], %s406_s20 }
  0xc1   : > { %p492_p9 = pnand %p495_p7, %p726_p8 }
  0xc3   : > { %p493_p10 = pneg %p492_p9 }
  0xc5   : > { %613 = dma.done.wait (%p493_p10), %s407_s21, 256  }
  0xc6   : > { %615 = vsyncadd (%p493_p10), %s407_s21, 4294967040  ;;  %s20_s27 = sadd.s32 1, %s638_s27   ;;  %s794_s22 = smov %s622_s23 }
  0xc7   : > { %p17_p11 = scmp.ge.s32.totalorder %s20_s27, 4   ;;  %s795_s23 = smov %s626_s24 }
  0xc8   : > { %s796_s24 = smov %s732_s8  ;;  %s797_s25 = smov %s634_s26 }
  0xc9   : > { %s798_s26 = smov %s800_s28  ;;  %19 = sbr.rel (!%p17_p11) target bundleno = 7 (0x7), region = 75 }
  0xce   :  { %413 = vsyncpa [#allocation5], 1 }
  0xcf   :  { %415 = vsyncpa [#allocation5 + $0x1], 1 }

</bundles_post_ra>
